<compile_context>
chip_gen: v6e
topology: v6e:2x2x1
jax: 0.10.0
libtpu: 0.0.40
codegen_flags: <defaults>
</compile_context>

<pallas_src>
import jax
import jax.numpy as jnp
from jax.experimental import pallas as pl
from jax.experimental.pallas import tpu as pltpu


def _round_up(x, m):
    return (x + m - 1) // m * m


def _inner_product_kernel(z_row_ref, zt_col_ref, o_ref):
    # z_row_ref : (TM, D)  row slab of z
    # zt_col_ref: (D, TN)  column slab of z.T (pre-transposed in the wrapper)
    # o_ref     : (TM, TN) output tile
    prod = jax.lax.dot_general(
        z_row_ref[...],
        zt_col_ref[...],
        dimension_numbers=(((1,), (0,)), ((), ())),
        preferred_element_type=jnp.float32,
    )
    o_ref[...] = jnp.maximum(prod, 0.0).astype(o_ref.dtype)


def inner_product(z, *, tm=None, tn=None):
    """Pallas equivalent of InnerProduct.forward: relu(z @ z.T)."""
    N, D = z.shape
    itemsize = jnp.dtype(z.dtype).itemsize
    sub_mult = {1: 32, 2: 16, 4: 8}.get(itemsize, 8)

    # MXU-sized, dtype-aware default tiles, shrunk for small N.
    if tm is None:
        tm_target = 256 if itemsize == 2 else 128
        tm = min(tm_target, _round_up(N, sub_mult))
    if tn is None:
        tn = min(512, _round_up(N, 128))

    # Pad so the tiles divide evenly; padded rows/cols produce zeros -> relu 0,
    # sliced off at the end.
    np_rows = _round_up(N, tm)
    np_cols = _round_up(N, tn)
    z_rows = jnp.pad(z, ((0, np_rows - N), (0, 0))) if np_rows != N else z
    z_cols = jnp.pad(z, ((0, np_cols - N), (0, 0))) if np_cols != N else z
    zt = z_cols.T  # (D, np_cols): one-time transpose, amortized over the grid.

    grid = (np_rows // tm, np_cols // tn)

    # Per-step VMEM: each operand/output tile is double-buffered by Pallas.
    vmem_needed = 2 * (tm * D + D * tn + tm * tn) * itemsize
    # Generous headroom but capped well under v7x's 64 MiB physical VMEM.
    vmem_limit = int(min(max(4 * vmem_needed, 32 * 1024 * 1024),
                         48 * 1024 * 1024))

    out_padded = pl.pallas_call(
        _inner_product_kernel,
        out_shape=jax.ShapeDtypeStruct((np_rows, np_cols), z.dtype),
        grid_spec=pltpu.PrefetchScalarGridSpec(
            num_scalar_prefetch=0,
            grid=grid,
            in_specs=[
                # Row slab of z: block index constant across inner (j) axis,
                # so it is not re-DMA'd while sweeping output columns.
                pl.BlockSpec((tm, D), lambda i, j: (i, 0)),
                # Column slab of z.T.
                pl.BlockSpec((D, tn), lambda i, j: (0, j)),
            ],
            out_specs=pl.BlockSpec((tm, tn), lambda i, j: (i, j)),
        ),
        compiler_params=pltpu.CompilerParams(
            # Both output axes are independent -> shardable across v7x's 2 TCs.
            dimension_semantics=("parallel", "parallel"),
            vmem_limit_bytes=vmem_limit,
        ),
    )(z_rows, zt)

    if np_rows != N or np_cols != N:
        out_padded = out_padded[:N, :N]
    return out_padded


def _reference(z):
    return jnp.maximum(z @ z.T, 0.0)


if __name__ == "__main__":
    key = jax.random.PRNGKey(0)

    # Primary small test consistent with the module (N nodes, D latent dims).
    N, D = 16, 32
    z = jax.random.normal(key, (N, D), dtype=jnp.float32)
    out = jax.block_until_ready(inner_product(z))
    ref = _reference(z)
    assert out.shape == (N, N)
    assert out.dtype == z.dtype
    assert jnp.allclose(out, ref, atol=1e-5, rtol=1e-5), "mismatch vs reference"

    # Ragged shape to exercise the padding / 2-D tiling path.
    key2 = jax.random.PRNGKey(0)
    N2, D2 = 200, 48
    z2 = jax.random.normal(key2, (N2, D2), dtype=jnp.float32)
    out2 = jax.block_until_ready(inner_product(z2))
    ref2 = _reference(z2)
    assert out2.shape == (N2, N2)
    assert jnp.allclose(out2, ref2, atol=1e-4, rtol=1e-4), "mismatch (ragged)"

    print("KERNEL_OK")
</pallas_src>

<mosaic_0001>
module attributes {stable_mosaic.version = 11 : i64} {
  func.func @_inner_product_kernel(%arg0: i32, %arg1: i32, %arg2: memref<16x32xf32, #tpu.memory_space<vmem>>, %arg3: memref<32x128xf32, #tpu.memory_space<vmem>>, %arg4: memref<16x128xf32, #tpu.memory_space<vmem>>) attributes {dimension_semantics = [#tpu.dimension_semantics<parallel>, #tpu.dimension_semantics<parallel>], iteration_bounds = array<i64: 1, 1>, scalar_prefetch = 0 : i64, scratch_operands = 0 : i64, tpu.core_type = #tpu.core_type<tc>, window_params = [{transform_indices = @transform_0, window_bounds = array<i64: 16, 32>}, {transform_indices = @transform_1, window_bounds = array<i64: 32, 128>}, {transform_indices = @transform_2, window_bounds = array<i64: 16, 128>}]} {
    %c0 = arith.constant 0 : index
    %c0_0 = arith.constant 0 : index
    %0 = vector.load %arg2[%c0, %c0_0] : memref<16x32xf32, #tpu.memory_space<vmem>>, vector<16x32xf32>
    %c0_1 = arith.constant 0 : index
    %c0_2 = arith.constant 0 : index
    %1 = vector.load %arg3[%c0_1, %c0_2] : memref<32x128xf32, #tpu.memory_space<vmem>>, vector<32x128xf32>
    %cst = arith.constant dense<0.000000e+00> : vector<16x128xf32>
    %2 = tpu.matmul %0, %1, %cst {dimension_numbers = #tpu.dot_dimension_numbers<[1], [0], [0], [1], [0, 0, 1, 1], [], []>} : vector<16x32xf32>, vector<32x128xf32>, vector<16x128xf32> -> vector<16x128xf32>
    %cst_3 = arith.constant 0.000000e+00 : f32
    %3 = vector.broadcast %cst_3 : f32 to vector<16x128xf32>
    %4 = arith.maximumf %2, %3 : vector<16x128xf32>
    %c0_4 = arith.constant 0 : index
    %c0_5 = arith.constant 0 : index
    %5 = vector.load %arg4[%c0_4, %c0_5] : memref<16x128xf32, #tpu.memory_space<vmem>>, vector<16x128xf32>
    tpu.vector_store %arg4[%c0_4, %c0_5], %4 {strides = array<i32>} : memref<16x128xf32, #tpu.memory_space<vmem>>, vector<16x128xf32>,
    return
  }
  func.func @transform_0(%arg0: i32, %arg1: i32) -> (i32, i32) {
    %c0_i32 = arith.constant 0 : i32
    %c0_i32_0 = arith.constant 0 : i32
    return %arg0, %c0_i32 : i32, i32
  }
  func.func @transform_1(%arg0: i32, %arg1: i32) -> (i32, i32) {
    %c0_i32 = arith.constant 0 : i32
    %c0_i32_0 = arith.constant 0 : i32
    return %c0_i32, %arg1 : i32, i32
  }
  func.func @transform_2(%arg0: i32, %arg1: i32) -> (i32, i32) {
    %c0_i32 = arith.constant 0 : i32
    return %arg0, %arg1 : i32, i32
  }
}

</mosaic_0001>

<bundles_post_ra>
// kernel: tpu_custom_call.1
= control target key start
LH: loop header
LB: loop body
LE: loop exit
PB: predicated region body
PF: predicated region fallthrough
CT: control target
= control target key end

     0   :  { %7 = vsyncpa [#allocation3], 0  ;;  %s280_s0 = inlined_call_operand.hbm [shape: f32[16,32], index: 0, kind: input, shape index: {}]   ;;  %s281_s1 = inlined_call_operand.hbm [shape: f32[32,128], index: 1, kind: input, shape index: {}]   ;;  %s282_s2 = inlined_call_operand.hbm [shape: f32[16,128], index: 2, kind: output, shape index: {}]  }
   0x1   :  { %8 = vsyncpa [#allocation6], 0 }
   0x2   :  { %9 = vsyncpa [#allocation4], 0  ;;  %s240_s9 = smov [#allocation2]  }
   0x3   :  { %s15_s10 = sshll.u32 %s240_s9, 4  ;;  %s16_s10 = int_to_ptr.vmem [resolvable:$true] %s15_s10 }
   0x4   :  { %s182_s11 = scalar_lea.vmem %s16_s10, 256  ;;  %p187_p1 = scmp.lt.s32.totalorder %s16_s10, %s16_s10 }
   0x5   :  { %p183_p0 = scmp.ne.s32.totalorder %s16_s10, %s182_s11  ;;  %p188_p2 = scmp.lt.s32.totalorder %s182_s11, %s182_s11 }
   0x7   :  { %p189_p3 = por %p188_p2, %p187_p1 }
   0x9   :  { %p190_p4 = pnand %p189_p3, %p183_p0 }
   0xb   :  { %193 = shalt.err (!%p190_p4)
}
   0xc   :  { %s241_s12 = smov 128   ;;  %s242_s13 = smov 8  }
   0xd   :  { %21 = dma.hbm_to_vmem [thread:$0]  %s280_s0, 256, %s16_s10, [#allocation3], %s241_s12, %s241_s12, %s242_s13  }
   0xe   :  { %s243_s16 = smov [#allocation5]  }
   0xf   :  { %s27_s17 = sshll.u32 %s243_s16, 4  ;;  %s28_s17 = int_to_ptr.vmem [resolvable:$true] %s27_s17 }
  0x10   :  { %s202_s18 = scalar_lea.vmem %s28_s17, 512  ;;  %p207_p6 = scmp.lt.s32.totalorder %s28_s17, %s28_s17 }
  0x11   :  { %p203_p5 = scmp.ne.s32.totalorder %s28_s17, %s202_s18  ;;  %p208_p7 = scmp.lt.s32.totalorder %s202_s18, %s202_s18 }
  0x13   :  { %p209_p8 = por %p208_p7, %p207_p6 }
  0x15   :  { %p210_p9 = pnand %p209_p8, %p203_p5 }
  0x17   :  { %213 = shalt.err (!%p210_p9)
}
  0x18   :  { %33 = dma.hbm_to_vmem [thread:$0]  %s281_s1, 512, %s28_s17, [#allocation6], %s241_s12, %s241_s12, %s242_s13  }
  0x19   :  { %234 = dma.done.wait [#allocation3], 256  }
  0x1a   :  { %235 = vsyncadd [#allocation3], 4294967040 }
  0x1b   :  { %236 = dma.done.wait [#allocation6], 512  }
  0x1c   :  { %237 = vsyncadd [#allocation6], 4294966784  ;;  %vm46_vm0 = vcmask 261120   ;;  %v45_v0 = vld [vmem:[#allocation5 + $0x18] sm:$0xff]  ;;  %v44_v1 = vld [vmem:[#allocation5 + $0x10] sm:$0xff]  ;;  %s244_s0 = smov [#allocation7]  }
  0x1d   :  { %158 = vmatprep.subr.mxu0 %v45_v0  ;;  %v40_v2 = vld [vmem:[#allocation2] sm:$0xff]  ;;  %v43_v3 = vld [vmem:[#allocation5 + $0x8] sm:$0xff]  ;;  %v42_v4 = vld [vmem:[#allocation5] sm:$0xff]  ;;  %s137_s1 = sshll.u32 %s244_s0, 4  ;;  %s138_s1 = int_to_ptr.vmem [resolvable:$true] %s137_s1 }
  0x1e   :  { %159 = vmatpush3.msra.mxu0 %v45_v0  ;;  %166 = vmatprep.mubr.msk.f32.mxu0 %vm46_vm0, %v40_v2  ;;  %v41_v5 = vld [vmem:[#allocation2 + $0x8] sm:$0xff]  ;;  %s214_s21 = scalar_lea.vmem %s138_s1, 256  ;;  %p219_p11 = scmp.lt.s32.totalorder %s138_s1, %s138_s1 }
  0x1f   :  { %160 = vmatprep.subr.mxu0 %v44_v1  ;;  %p215_p10 = scmp.ne.s32.totalorder %s138_s1, %s214_s21  ;;  %p220_p12 = scmp.lt.s32.totalorder %s214_s21, %s214_s21 }
  0x20   :  { %161 = vmatpush3.msra.mxu0 %v44_v1 }
  0x21   :  { %162 = vmatprep.subr.mxu0 %v43_v3  ;;  %p221_p13 = por %p220_p12, %p219_p11 }
  0x22   :  { %163 = vmatpush3.msra.mxu0 %v43_v3 }
  0x23   :  { %164 = vmatprep.subr.mxu0 %v42_v4  ;;  %p222_p0 = pnand %p221_p13, %p215_p10 }
  0x24   :  { %165 = vmatpush3.msra.mxu0 %v42_v4 }
  0x25   :  { %167 = vmatmul.mubr.msk.f32.vlgmr.msra.gmra.mxu0 %vm46_vm0, %v41_v5 }
  0xe5   :  { %v168_v6 = vpop.f32.mrf.mxu0 }
  0xe6   :  { %v129_v7 = vmax.f32 %v168_v6, 0.0 }
  0xe7   :  { %v119_v8 = vpop.f32.mrf.mxu0 }
  0xe8   :  { %131 = vst [vmem:[#allocation7 + $0x8] sm:$0xff] %v129_v7  ;;  %v128_v9 = vmax.f32 %v119_v8, 0.0 }
  0xea   :  { %130 = vst [vmem:[#allocation7] sm:$0xff] %v128_v9 }
  0xeb   :  { %225 = shalt.err (!%p222_p0)
}
  0xec   :  { %143 = dma.vmem_to_hbm [thread:$0]  %s138_s1, 256, %s282_s2, [#allocation4], %s241_s12, %s241_s12, %s242_s13  }
  0xed   :  { %238 = dma.done.wait [#allocation4], 256  }
  0xee   :  { %239 = vsyncadd [#allocation4], 4294967040 }
  0xef   :  { %147 = vsyncpa [#allocation3], 1 }
  0xf0   :  { %148 = vsyncpa [#allocation6], 1 }
  0xf1   :  { %149 = vsyncpa [#allocation4], 1 }

</bundles_post_ra>
